<compile_context>
chip_gen: v5e
topology: v5e:2x2
jax: 0.10.0
libtpu: 0.0.40
codegen_flags: <defaults>
</compile_context>

<pallas_src>
import jax
import jax.numpy as jnp
from jax.experimental import pallas as pl
from jax.experimental.pallas import tpu as pltpu


# ----------------------------------------------------------------------------
# Pallas kernel
# ----------------------------------------------------------------------------

def _dgcn_kernel(x_ref, m_ref, b_ref, o_ref):
    """Fused diffusion-GCN: one GEMM + bias.

    x_ref: (B*T, C*N)    activations, row = (b,t) slab, col = (c,n)
    m_ref: (C*N, Co*N)   fused diffusion + 1x1-conv operator
    b_ref: (1, Co*N)     bias, broadcast over rows
    o_ref: (B*T, Co*N)   output, lane-dense store
    """
    o_ref[...] = (
        jnp.dot(x_ref[...], m_ref[...], preferred_element_type=jnp.float32)
        + b_ref[...]
    )


# ----------------------------------------------------------------------------
# Wrapper
# ----------------------------------------------------------------------------

def diffusion_gcn(params, x, supports, *, order=1):
    """Diffusion_GCN forward (inference).

    params: {"w": (c_out, (order*len(supports)+1)*c_in), "b": (c_out,)}
    x:        (B, C_in, N, T) float32 (NCHW, matching the PyTorch module)
    supports: list of (N, N) adjacency / transition matrices
    returns:  (B, C_out, N, T)
    """
    # TODO(synk): F.dropout after the 1x1 conv is identity in inference mode.
    B, C, N, T = x.shape
    S = len(supports)
    nb = order * S + 1                       # number of concatenated branches
    Co, K = params["w"].shape
    assert K == nb * C, (K, nb, C)

    # ---- activations: (B, C, N, T) -> (B*T, C*N), column index = (c, n) ----
    x_flat = jnp.transpose(x.astype(jnp.float32), (0, 3, 1, 2)).reshape(B * T, C * N)

    # ---- per-branch node operators P_k: identity, then A_s, A_s^2, ... -----
    mats = [jnp.eye(N, dtype=jnp.float32)]
    for a in supports:
        ap = a.astype(jnp.float32)
        mats.append(ap)
        for _ in range(order - 1):
            ap = ap @ a.astype(jnp.float32)  # nconv chaining == matrix power
            mats.append(ap)
    P = jnp.stack(mats, axis=0)                            # (nb, N, N)

    # ---- fused operator M[(c,n),(o,m)] = sum_k W[o,k,c] * P_k[n,m] ---------
    Wt = params["w"].astype(jnp.float32).reshape(Co, nb, C)
    Wt = jnp.transpose(Wt, (1, 2, 0))                      # (nb, C, Co)
    M = jnp.einsum("kco,knm->cnom", Wt, P).reshape(C * N, Co * N)

    # ---- bias row, broadcast over (b,t) rows and nodes m -------------------
    b_row = jnp.broadcast_to(
        params["b"].astype(jnp.float32)[:, None], (Co, N)).reshape(1, Co * N)

    out2d = pl.pallas_call(
        _dgcn_kernel,
        out_shape=jax.ShapeDtypeStruct((B * T, Co * N), jnp.float32),
        in_specs=[pl.BlockSpec(memory_space=pltpu.MemorySpace.VMEM)] * 3,
        out_specs=pl.BlockSpec(memory_space=pltpu.MemorySpace.VMEM),
    )(x_flat, M, b_row)

    # back to NCHW: (B*T, Co*N) -> (B, T, Co, N) -> (B, Co, N, T)
    return jnp.transpose(out2d.reshape(B, T, Co, N), (0, 2, 3, 1))


# ----------------------------------------------------------------------------
# Pure-JAX reference (mirrors the PyTorch module exactly)
# ----------------------------------------------------------------------------

def diffusion_gcn_reference(params, x, supports, *, order=1):
    out = [x]
    for a in supports:
        x1 = jnp.einsum("bcnt,nm->bcmt", x, a)
        out.append(x1)
        for _ in range(2, order + 1):
            x1 = jnp.einsum("bcnt,nm->bcmt", x1, a)
            out.append(x1)
    h = jnp.concatenate(out, axis=1)
    co = params["w"].shape[0]
    y = jnp.einsum("ok,bknt->bont", params["w"], h)
    return y + params["b"].reshape(1, co, 1, 1)


# ----------------------------------------------------------------------------
# Main
# ----------------------------------------------------------------------------

if __name__ == "__main__":
    B, C_in, N, T = 2, 4, 16, 8
    C_out = 8
    support_len, order = 2, 1          # module defaults
    # (dropout p is irrelevant in inference mode)

    key = jax.random.PRNGKey(0)
    kx, kw, kb, ka1, ka2 = jax.random.split(key, 5)

    x = jax.random.normal(kx, (B, C_in, N, T), dtype=jnp.float32)

    K = (order * support_len + 1) * C_in
    params = {
        "w": 0.1 * jax.random.normal(kw, (C_out, K), dtype=jnp.float32),
        "b": 0.1 * jax.random.normal(kb, (C_out,), dtype=jnp.float32),
    }

    def make_support(k):
        a = jax.random.uniform(k, (N, N), dtype=jnp.float32)
        return a / jnp.sum(a, axis=1, keepdims=True)   # row-normalized

    supports = [make_support(ka1), make_support(ka2)]

    out = diffusion_gcn(params, x, supports, order=order)
    ref = diffusion_gcn_reference(params, x, supports, order=order)
    jax.block_until_ready((out, ref))

    assert out.shape == (B, C_out, N, T), out.shape
    max_err = float(jnp.max(jnp.abs(out - ref)))
    assert jnp.allclose(out, ref, atol=1e-2, rtol=1e-2), max_err
    print("KERNEL_OK")
</pallas_src>

<mosaic_0001>
module attributes {stable_mosaic.version = 11 : i64} {
  func.func @_dgcn_kernel(%arg0: memref<16x64xf32, #tpu.memory_space<vmem>>, %arg1: memref<64x128xf32, #tpu.memory_space<vmem>>, %arg2: memref<1x128xf32, #tpu.memory_space<vmem>>, %arg3: memref<16x128xf32, #tpu.memory_space<vmem>>) attributes {dimension_semantics = [], scalar_prefetch = 0 : i64, scratch_operands = 0 : i64, tpu.core_type = #tpu.core_type<tc>} {
    %c0 = arith.constant 0 : index
    %c0_0 = arith.constant 0 : index
    %0 = vector.load %arg0[%c0, %c0_0] : memref<16x64xf32, #tpu.memory_space<vmem>>, vector<16x64xf32>
    %c0_1 = arith.constant 0 : index
    %c0_2 = arith.constant 0 : index
    %1 = vector.load %arg1[%c0_1, %c0_2] : memref<64x128xf32, #tpu.memory_space<vmem>>, vector<64x128xf32>
    %cst = arith.constant dense<0.000000e+00> : vector<16x128xf32>
    %2 = tpu.matmul %0, %1, %cst {dimension_numbers = #tpu.dot_dimension_numbers<[1], [0], [0], [1], [0, 0, 1, 1], [], []>} : vector<16x64xf32>, vector<64x128xf32>, vector<16x128xf32> -> vector<16x128xf32>
    %c0_3 = arith.constant 0 : index
    %c0_4 = arith.constant 0 : index
    %3 = vector.load %arg2[%c0_3, %c0_4] : memref<1x128xf32, #tpu.memory_space<vmem>>, vector<1x128xf32>
    %4 = vector.broadcast %3 : vector<1x128xf32> to vector<16x128xf32>
    %5 = arith.addf %2, %4 : vector<16x128xf32>
    %c0_5 = arith.constant 0 : index
    %c0_6 = arith.constant 0 : index
    %6 = vector.load %arg3[%c0_5, %c0_6] : memref<16x128xf32, #tpu.memory_space<vmem>>, vector<16x128xf32>
    tpu.vector_store %arg3[%c0_5, %c0_6], %5 {strides = array<i32>} : memref<16x128xf32, #tpu.memory_space<vmem>>, vector<16x128xf32>,
    return
  }
}

</mosaic_0001>

<bundles_post_ra>
// kernel: tpu_custom_call.1
= control target key start
LH: loop header
LB: loop body
LE: loop exit
PB: predicated region body
PF: predicated region fallthrough
CT: control target
= control target key end

     0   :  { %8 = vsyncpa [#allocation3], 0  ;;  %s253_s0 = inlined_call_operand.hbm [shape: f32[16,64], index: 0, kind: input, shape index: {}]   ;;  %s254_s1 = inlined_call_operand.hbm [shape: f32[64,128], index: 1, kind: input, shape index: {}]   ;;  %s255_s2 = inlined_call_operand.vmem [shape: f32[1,128], index: 2, kind: input, shape index: {}]   ;;  %s256_s3 = inlined_call_operand.hbm [shape: f32[16,128], index: 3, kind: output, shape index: {}]  }
   0x1   :  { %9 = vsyncpa [#allocation6], 0 }
   0x2   :  { %10 = vsyncpa [#allocation4], 0  ;;  %s15_s14 = sshll.u32 %s253_s0, 4  ;;  %s207_s15 = smov [#allocation2]   ;;  %s16_s14 = int_to_ptr.hbm [resolvable:$true] %s15_s14 }
   0x3   :  { %s17_s16 = sshll.u32 %s207_s15, 4  ;;  %s28_s19 = sshll.u32 %s254_s1, 4  ;;  %s18_s16 = int_to_ptr.vmem [resolvable:$true] %s17_s16  ;;  %s29_s19 = int_to_ptr.hbm [resolvable:$true] %s28_s19 }
   0x4   :  { %s208_s20 = smov 128   ;;  %s209_s21 = smov 8  }
   0x5   :  { %23 = dma.hbm_to_vmem [thread:$0]  %s16_s14, 256, %s18_s16, [#allocation3], %s208_s20, %s208_s20, %s209_s21  }
   0x6   :  { %s210_s22 = smov [#allocation5]  }
   0x7   :  { %s30_s23 = sshll.u32 %s210_s22, 4  ;;  %s31_s23 = int_to_ptr.vmem [resolvable:$true] %s30_s23 }
   0x8   :  { %36 = dma.hbm_to_vmem [thread:$0]  %s29_s19, 1024, %s31_s23, [#allocation6], %s208_s20, %s208_s20, %s209_s21  }
   0x9   :  { %201 = dma.done.wait [#allocation3], 256  }
   0xa   :  { %202 = vsyncadd [#allocation3], 4294967040 }
   0xb   :  { %203 = dma.done.wait [#allocation6], 1024  }
   0xc   :  { %204 = vsyncadd [#allocation6], 4294966272  ;;  %v56_v0 = vld [vmem:[#allocation5 + $0x38] sm:$0xff]  ;;  %v55_v1 = vld [vmem:[#allocation5 + $0x30] sm:$0xff]  ;;  %vm61_vm0 = vcmask 523264   ;;  %s211_s24 = smov [#allocation7]  }
   0xd   :  { %76 = vmatpush.msra.mxu0 %v56_v0  ;;  %115 = vmatpush.msra.mxu1 %v56_v0  ;;  %v54_v2 = vld [vmem:[#allocation5 + $0x28] sm:$0xff]  ;;  %v53_v3 = vld [vmem:[#allocation5 + $0x20] sm:$0xff]  ;;  %v52_v4 = vld [vmem:[#allocation5 + $0x18] sm:$0xff]  ;;  %s97_s25 = sshll.u32 %s211_s24, 4  ;;  %s99_s28 = sshll.u32 %s256_s3, 4  ;;  %s98_s25 = int_to_ptr.vmem [resolvable:$true] %s97_s25  ;;  %s100_s28 = int_to_ptr.hbm [resolvable:$true] %s99_s28 }
   0xe   :  { %v51_v5 = vld [vmem:[#allocation5 + $0x10] sm:$0xff]  ;;  %v50_v6 = vld [vmem:[#allocation5 + $0x8] sm:$0xff]  ;;  %v49_v7 = vld [vmem:[#allocation5] sm:$0xff] }
   0xf   :  { %77 = vmatpush.msra.mxu0 %v55_v1  ;;  %116 = vmatpush.msra.mxu1 %v55_v1  ;;  %v47_v8 = vld [vmem:[#allocation2] sm:$0xff]  ;;  %v48_v9 = vld [vmem:[#allocation2 + $0x8] sm:$0xff] }
  0x10   :  { %v128_v10 = vld [vmem:[%s255_s2] ss:$0 sm:$0xff] }
  0x11   :  { %78 = vmatpush.msra.mxu0 %v54_v2  ;;  %117 = vmatpush.msra.mxu1 %v54_v2 }
  0x13   :  { %79 = vmatpush.msra.mxu0 %v53_v3  ;;  %118 = vmatpush.msra.mxu1 %v53_v3 }
  0x15   :  { %80 = vmatpush.msra.mxu0 %v52_v4  ;;  %119 = vmatpush.msra.mxu1 %v52_v4 }
  0x17   :  { %81 = vmatpush.msra.mxu0 %v51_v5  ;;  %120 = vmatpush.msra.mxu1 %v51_v5 }
  0x19   :  { %82 = vmatpush.msra.mxu0 %v50_v6  ;;  %121 = vmatpush.msra.mxu1 %v50_v6 }
  0x1b   :  { %83 = vmatpush.msra.mxu0 %v49_v7  ;;  %122 = vmatpush.msra.mxu1 %v49_v7 }
  0x1c   :  { %113 = vmatmul.msk.f32.vlgmr.msra.gmra.mxu0 %vm61_vm0, %v47_v8  ;;  %114 = vmatmul.msk.f32.vlgmr.msra.gmra.mxu1 %vm61_vm0, %v48_v9 }
  0x99   :  { %v85_v11 = vpop.f32.mrf.mxu0  ;;  %v88_v12 = vpop.f32.mrf.mxu1 }
  0x9a   :  { %v86_v13 = vadd.f32 %v128_v10, %v85_v11  ;;  %v89_v14 = vadd.f32 %v128_v10, %v88_v12 }
  0x9c   :  { %91 = vst [vmem:[#allocation7] sm:$0xff] %v86_v13 }
  0x9d   :  { %92 = vst [vmem:[#allocation7 + $0x8] sm:$0xff] %v89_v14 }
  0x9e   :  { %105 = dma.vmem_to_hbm [thread:$0]  %s98_s25, 256, %s100_s28, [#allocation4], %s208_s20, %s208_s20, %s209_s21  }
  0x9f   :  { %205 = dma.done.wait [#allocation4], 256  }
  0xa0   :  { %206 = vsyncadd [#allocation4], 4294967040 }
  0xa1   :  { %110 = vsyncpa [#allocation3], 1 }
  0xa2   :  { %111 = vsyncpa [#allocation6], 1 }
  0xa3   :  { %112 = vsyncpa [#allocation4], 1 }

</bundles_post_ra>
